<compile_context>
chip_gen: v5e
topology: v5e:2x2
jax: 0.10.0
libtpu: 0.0.40
codegen_flags: <defaults>
</compile_context>

<pallas_src>
import math
import warnings
from functools import partial

import jax
import jax.numpy as jnp
from jax.experimental import pallas as pl
from jax.experimental.pallas import tpu as pltpu

# Buffer donation is a no-op (with a warning) on non-TPU backends; keep output clean.
warnings.filterwarnings("ignore", message=".*donated buffer.*")


def _ma_update_kernel(ptr_ref,        # (1,) int32 scalar prefetch (used by index_maps)
                      evict_ref,      # (1,1,F) oldest buffer row (being evicted)
                      sum_in_ref,     # (1,1,F) carried running sum (state in)
                      x_ref,          # (1,1,F) new sample for this grid step
                      buf_row_ref,    # (1,1,F) buffer row out (aliased -> in-place write)
                      sum_out_ref,    # (1,1,F) running sum out (VMEM-resident accumulator)
                      mean_ref,       # (1,1,F) mean for this grid step
                      *, inv_buffer_size):
    del ptr_ref  # only consumed by the index_maps
    t = pl.program_id(0)

    @pl.when(t == 0)
    def _seed():
        # Seed the resident accumulator from the carried state.
        sum_out_ref[...] = sum_in_ref[...]

    x = x_ref[...]
    new_sum = sum_out_ref[...] + x - evict_ref[...]
    sum_out_ref[...] = new_sum
    buf_row_ref[...] = x                       # overwrite the evicted (oldest) row only
    mean_ref[...] = new_sum * inv_buffer_size


def _ma_update_call(buffer, running_sum, xs, ptr):
    """buffer: (B,1,F), running_sum: (1,1,F), xs: (T,1,F), ptr: (1,) int32."""
    B, _, F = buffer.shape
    T = xs.shape[0]
    inv_b = 1.0 / B

    grid_spec = pltpu.PrefetchScalarGridSpec(
        num_scalar_prefetch=1,
        grid=(T,),
        in_specs=[
            # evicted row: dynamic leading-dim index (ptr + t) % B
            pl.BlockSpec((1, 1, F), lambda t, p: ((p[0] + t) % B, 0, 0)),
            # running sum (same block every step)
            pl.BlockSpec((1, 1, F), lambda t, p: (0, 0, 0)),
            # x_t
            pl.BlockSpec((1, 1, F), lambda t, p: (t, 0, 0)),
        ],
        out_specs=[
            # buffer row write, same dynamic index (aliased with the input buffer)
            pl.BlockSpec((1, 1, F), lambda t, p: ((p[0] + t) % B, 0, 0)),
            # new running sum (constant block index -> resident accumulator)
            pl.BlockSpec((1, 1, F), lambda t, p: (0, 0, 0)),
            # mean_t
            pl.BlockSpec((1, 1, F), lambda t, p: (t, 0, 0)),
        ],
    )

    return pl.pallas_call(
        partial(_ma_update_kernel, inv_buffer_size=inv_b),
        grid_spec=grid_spec,
        out_shape=(
            jax.ShapeDtypeStruct((B, 1, F), buffer.dtype),       # new buffer
            jax.ShapeDtypeStruct((1, 1, F), running_sum.dtype),  # new running sum
            jax.ShapeDtypeStruct((T, 1, F), running_sum.dtype),  # means per step
        ),
        # Callable args are (ptr, buffer, running_sum, xs): alias buffer -> new buffer.
        input_output_aliases={1: 0},
        compiler_params=pltpu.CompilerParams(
            dimension_semantics=("arbitrary",)),  # sequential carry (running sum)
    )(ptr, buffer, running_sum, xs)


# Donate the buffer so the aliased in-place row write is a true in-place HBM update.
_ma_update = jax.jit(_ma_update_call, donate_argnums=(0,))


def _ma_resync_kernel(buf_ref, sum_ref):
    # Exact full reduction over the buffer axis, used rarely to bound FP drift.
    sum_ref[...] = jnp.sum(buf_ref[...], axis=0, keepdims=True)


def _ma_resync_call(buffer_2d):
    B, F = buffer_2d.shape
    return pl.pallas_call(
        _ma_resync_kernel,
        grid_spec=pltpu.PrefetchScalarGridSpec(
            num_scalar_prefetch=0,
            grid=(1,),
            in_specs=[pl.BlockSpec((B, F), lambda i: (0, 0))],
            out_specs=pl.BlockSpec((1, F), lambda i: (0, 0)),
        ),
        out_shape=jax.ShapeDtypeStruct((1, F), buffer_2d.dtype),
        compiler_params=pltpu.CompilerParams(dimension_semantics=("arbitrary",)),
    )(buffer_2d)


_ma_resync = jax.jit(_ma_resync_call)


class MovingAverage:
    """Functional-state port of the PyTorch MovingAverage module.

    State: ring buffer (B, 1, F) + running sum (1, 1, F) + python write-pointer.
    `__call__` matches the torch forward; `forward_many` fuses T steps into a
    single pallas_call.
    """

    def __init__(self, size, buffer_size=128, init_value=0.0, resync_every=1024):
        self.size = tuple(size)
        self.buffer_size = int(buffer_size)
        self.feat = int(math.prod(self.size))
        self.resync_every = int(resync_every)
        self.buffer = jnp.full((self.buffer_size, 1, self.feat), init_value,
                               dtype=jnp.float32)
        self.running_sum = jnp.full((1, 1, self.feat),
                                    init_value * self.buffer_size,
                                    dtype=jnp.float32)
        self.ptr = 0               # index of the oldest row (next to overwrite)
        self._since_resync = 0

    def _update(self, xs_flat):
        T = xs_flat.shape[0]
        ptr = jnp.asarray([self.ptr], dtype=jnp.int32)
        new_buf, new_sum, means = _ma_update(self.buffer, self.running_sum,
                                             xs_flat, ptr)
        self.buffer = new_buf
        self.running_sum = new_sum
        self.ptr = (self.ptr + T) % self.buffer_size
        self._since_resync += T
        if self._since_resync >= self.resync_every:
            self.resync()
        return means

    def resync(self):
        """Recompute the exact running sum (bounds FP drift of the incremental sum)."""
        self.running_sum = _ma_resync(
            self.buffer.reshape(self.buffer_size, self.feat)
        ).reshape(1, 1, self.feat)
        self._since_resync = 0

    def __call__(self, x):
        x_flat = x.reshape(1, 1, self.feat).astype(jnp.float32)
        means = self._update(x_flat)
        return means.reshape(self.size)

    def forward_many(self, xs):
        """Fused multi-step update: xs has shape (T,) + size; returns (T,) + size means."""
        T = xs.shape[0]
        xs_flat = xs.reshape(T, 1, self.feat).astype(jnp.float32)
        means = self._update(xs_flat)
        return means.reshape((T,) + self.size)

    @property
    def logical_buffer(self):
        """Buffer in PyTorch order (oldest first), shape (buffer_size,) + size."""
        buf = self.buffer.reshape((self.buffer_size,) + self.size)
        return jnp.roll(buf, shift=-self.ptr, axis=0)


if __name__ == "__main__":
    # size = (C, H, W) = (4, 16, 16) -> F = 1024; buffer_size = 128
    size = (4, 16, 16)
    buffer_size = 128
    T = 8

    key = jax.random.PRNGKey(0)
    k1, k2, k3 = jax.random.split(key, 3)
    x1 = jax.random.normal(k1, size, dtype=jnp.float32)
    x2 = jax.random.normal(k2, size, dtype=jnp.float32)
    xs = jax.random.normal(k3, (T,) + size, dtype=jnp.float32)

    # pure-JAX reference mirroring the torch forward exactly
    def ref_step(buf, x):
        new_buf = jnp.concatenate([buf[1:], x[None]], axis=0)
        return new_buf, new_buf.mean(axis=0)

    ref_buf = jnp.zeros((buffer_size,) + size, dtype=jnp.float32)
    ref_buf, ref_m1 = ref_step(ref_buf, x1)
    ref_buf, ref_m2 = ref_step(ref_buf, x2)
    ref_means = []
    for t in range(T):
        ref_buf, m = ref_step(ref_buf, xs[t])
        ref_means.append(m)
    ref_means = jnp.stack(ref_means)

    ma = MovingAverage(size, buffer_size=buffer_size, init_value=0.0)
    m1 = ma(x1)                    # single-step (T=1) kernel call
    m2 = ma(x2)
    ma.resync()                    # exercise the exact-sum resync kernel
    ms = ma.forward_many(xs)       # T steps fused into one pallas_call
    jax.block_until_ready((m1, m2, ms, ma.buffer, ma.running_sum))

    assert jnp.allclose(m1, ref_m1, atol=1e-5, rtol=1e-5)
    assert jnp.allclose(m2, ref_m2, atol=1e-5, rtol=1e-5)
    assert jnp.allclose(ms, ref_means, atol=1e-5, rtol=1e-5)
    assert jnp.allclose(ma.logical_buffer, ref_buf, atol=1e-6, rtol=1e-6)

    print("KERNEL_OK")
</pallas_src>

<mosaic_0001>
module attributes {stable_mosaic.version = 11 : i64} {
  func.func @_ma_update_kernel(%arg0: i32, %arg1: memref<1xi32, #tpu.memory_space<smem>>, %arg2: memref<1x1x1024xf32, #tpu.memory_space<vmem>>, %arg3: memref<1x1x1024xf32, #tpu.memory_space<vmem>>, %arg4: memref<1x1x1024xf32, #tpu.memory_space<vmem>>, %arg5: memref<1x1x1024xf32, #tpu.memory_space<vmem>>, %arg6: memref<1x1x1024xf32, #tpu.memory_space<vmem>>, %arg7: memref<1x1x1024xf32, #tpu.memory_space<vmem>>) attributes {dimension_semantics = [#tpu.dimension_semantics<arbitrary>], iteration_bounds = array<i64: 1>, scalar_prefetch = 1 : i64, scratch_operands = 0 : i64, tpu.core_type = #tpu.core_type<tc>, window_params = [{transform_indices = @transform_0, window_bounds = array<i64: 1, 1, 1024>}, {pipeline_mode = #tpu.pipeline_mode<synchronous>, transform_indices = @transform_1, window_bounds = array<i64: 1, 1, 1024>}, {transform_indices = @transform_2, window_bounds = array<i64: 1, 1, 1024>}, {transform_indices = @transform_3, window_bounds = array<i64: 1, 1, 1024>}, {pipeline_mode = #tpu.pipeline_mode<synchronous>, transform_indices = @transform_4, window_bounds = array<i64: 1, 1, 1024>}, {transform_indices = @transform_5, window_bounds = array<i64: 1, 1, 1024>}]} {
    %c0_i32 = arith.constant 0 : i32
    %0 = arith.cmpi eq, %arg0, %c0_i32 : i32
    %1 = arith.extui %0 : i1 to i32
    %c0_i32_0 = arith.constant 0 : i32
    %2 = arith.cmpi ne, %1, %c0_i32_0 : i32
    scf.if %2 {
      %c0_18 = arith.constant 0 : index
      %c0_19 = arith.constant 0 : index
      %c0_20 = arith.constant 0 : index
      %13 = vector.load %arg3[%c0_18, %c0_19, %c0_20] : memref<1x1x1024xf32, #tpu.memory_space<vmem>>, vector<1x1x1024xf32>
      %c0_21 = arith.constant 0 : index
      %c0_22 = arith.constant 0 : index
      %c0_23 = arith.constant 0 : index
      %14 = vector.load %arg6[%c0_21, %c0_22, %c0_23] : memref<1x1x1024xf32, #tpu.memory_space<vmem>>, vector<1x1x1024xf32>
      tpu.vector_store %arg6[%c0_21, %c0_22, %c0_23], %13 {strides = array<i32>} : memref<1x1x1024xf32, #tpu.memory_space<vmem>>, vector<1x1x1024xf32>,
    } else {
    }
    %c0 = arith.constant 0 : index
    %c0_1 = arith.constant 0 : index
    %c0_2 = arith.constant 0 : index
    %3 = vector.load %arg4[%c0, %c0_1, %c0_2] : memref<1x1x1024xf32, #tpu.memory_space<vmem>>, vector<1x1x1024xf32>
    %c0_3 = arith.constant 0 : index
    %c0_4 = arith.constant 0 : index
    %c0_5 = arith.constant 0 : index
    %4 = vector.load %arg6[%c0_3, %c0_4, %c0_5] : memref<1x1x1024xf32, #tpu.memory_space<vmem>>, vector<1x1x1024xf32>
    %5 = arith.addf %4, %3 : vector<1x1x1024xf32>
    %c0_6 = arith.constant 0 : index
    %c0_7 = arith.constant 0 : index
    %c0_8 = arith.constant 0 : index
    %6 = vector.load %arg2[%c0_6, %c0_7, %c0_8] : memref<1x1x1024xf32, #tpu.memory_space<vmem>>, vector<1x1x1024xf32>
    %7 = arith.subf %5, %6 : vector<1x1x1024xf32>
    %c0_9 = arith.constant 0 : index
    %c0_10 = arith.constant 0 : index
    %c0_11 = arith.constant 0 : index
    %8 = vector.load %arg6[%c0_9, %c0_10, %c0_11] : memref<1x1x1024xf32, #tpu.memory_space<vmem>>, vector<1x1x1024xf32>
    tpu.vector_store %arg6[%c0_9, %c0_10, %c0_11], %7 {strides = array<i32>} : memref<1x1x1024xf32, #tpu.memory_space<vmem>>, vector<1x1x1024xf32>,
    %c0_12 = arith.constant 0 : index
    %c0_13 = arith.constant 0 : index
    %c0_14 = arith.constant 0 : index
    %9 = vector.load %arg5[%c0_12, %c0_13, %c0_14] : memref<1x1x1024xf32, #tpu.memory_space<vmem>>, vector<1x1x1024xf32>
    tpu.vector_store %arg5[%c0_12, %c0_13, %c0_14], %3 {strides = array<i32>} : memref<1x1x1024xf32, #tpu.memory_space<vmem>>, vector<1x1x1024xf32>,
    %cst = arith.constant 7.812500e-03 : f32
    %10 = vector.broadcast %cst : f32 to vector<1x1x1024xf32>
    %11 = arith.mulf %7, %10 : vector<1x1x1024xf32>
    %c0_15 = arith.constant 0 : index
    %c0_16 = arith.constant 0 : index
    %c0_17 = arith.constant 0 : index
    %12 = vector.load %arg7[%c0_15, %c0_16, %c0_17] : memref<1x1x1024xf32, #tpu.memory_space<vmem>>, vector<1x1x1024xf32>
    tpu.vector_store %arg7[%c0_15, %c0_16, %c0_17], %11 {strides = array<i32>} : memref<1x1x1024xf32, #tpu.memory_space<vmem>>, vector<1x1x1024xf32>,
    return
  }
  func.func @transform_0(%arg0: i32, %arg1: memref<1xi32, #tpu.memory_space<smem>>) -> (i32, i32, i32) {
    %c0 = arith.constant 0 : index
    %0 = memref.load %arg1[%c0] : memref<1xi32, #tpu.memory_space<smem>>
    %1 = arith.addi %0, %arg0 : i32
    %c128_i32 = arith.constant 128 : i32
    %c0_i32 = arith.constant 0 : i32
    %2 = arith.cmpi eq, %c128_i32, %c0_i32 : i32
    %c1_i32 = arith.constant 1 : i32
    %3 = arith.select %2, %c1_i32, %c128_i32 : i32
    %4 = arith.remsi %1, %3 : i32
    %c0_i32_0 = arith.constant 0 : i32
    %5 = arith.cmpi ne, %4, %c0_i32_0 : i32
    %c0_i32_1 = arith.constant 0 : i32
    %6 = arith.cmpi slt, %4, %c0_i32_1 : i32
    %c0_i32_2 = arith.constant 0 : i32
    %7 = arith.cmpi slt, %3, %c0_i32_2 : i32
    %8 = arith.xori %6, %7 : i1
    %9 = arith.andi %8, %5 : i1
    %10 = arith.addi %4, %3 : i32
    %11 = arith.select %9, %10, %4 : i32
    %c0_i32_3 = arith.constant 0 : i32
    %c0_i32_4 = arith.constant 0 : i32
    %c0_i32_5 = arith.constant 0 : i32
    return %11, %c0_i32_3, %c0_i32_4 : i32, i32, i32
  }
  func.func @transform_1(%arg0: i32, %arg1: memref<1xi32, #tpu.memory_space<smem>>) -> (i32, i32, i32) {
    %c0_i32 = arith.constant 0 : i32
    %c0_i32_0 = arith.constant 0 : i32
    %c0_i32_1 = arith.constant 0 : i32
    %c0_i32_2 = arith.constant 0 : i32
    return %c0_i32, %c0_i32_0, %c0_i32_1 : i32, i32, i32
  }
  func.func @transform_2(%arg0: i32, %arg1: memref<1xi32, #tpu.memory_space<smem>>) -> (i32, i32, i32) {
    %c0_i32 = arith.constant 0 : i32
    %c0_i32_0 = arith.constant 0 : i32
    %c0_i32_1 = arith.constant 0 : i32
    return %arg0, %c0_i32, %c0_i32_0 : i32, i32, i32
  }
  func.func @transform_3(%arg0: i32, %arg1: memref<1xi32, #tpu.memory_space<smem>>) -> (i32, i32, i32) {
    %c0 = arith.constant 0 : index
    %0 = memref.load %arg1[%c0] : memref<1xi32, #tpu.memory_space<smem>>
    %1 = arith.addi %0, %arg0 : i32
    %c128_i32 = arith.constant 128 : i32
    %c0_i32 = arith.constant 0 : i32
    %2 = arith.cmpi eq, %c128_i32, %c0_i32 : i32
    %c1_i32 = arith.constant 1 : i32
    %3 = arith.select %2, %c1_i32, %c128_i32 : i32
    %4 = arith.remsi %1, %3 : i32
    %c0_i32_0 = arith.constant 0 : i32
    %5 = arith.cmpi ne, %4, %c0_i32_0 : i32
    %c0_i32_1 = arith.constant 0 : i32
    %6 = arith.cmpi slt, %4, %c0_i32_1 : i32
    %c0_i32_2 = arith.constant 0 : i32
    %7 = arith.cmpi slt, %3, %c0_i32_2 : i32
    %8 = arith.xori %6, %7 : i1
    %9 = arith.andi %8, %5 : i1
    %10 = arith.addi %4, %3 : i32
    %11 = arith.select %9, %10, %4 : i32
    %c0_i32_3 = arith.constant 0 : i32
    %c0_i32_4 = arith.constant 0 : i32
    %c0_i32_5 = arith.constant 0 : i32
    return %11, %c0_i32_3, %c0_i32_4 : i32, i32, i32
  }
  func.func @transform_4(%arg0: i32, %arg1: memref<1xi32, #tpu.memory_space<smem>>) -> (i32, i32, i32) {
    %c0_i32 = arith.constant 0 : i32
    %c0_i32_0 = arith.constant 0 : i32
    %c0_i32_1 = arith.constant 0 : i32
    %c0_i32_2 = arith.constant 0 : i32
    return %c0_i32, %c0_i32_0, %c0_i32_1 : i32, i32, i32
  }
  func.func @transform_5(%arg0: i32, %arg1: memref<1xi32, #tpu.memory_space<smem>>) -> (i32, i32, i32) {
    %c0_i32 = arith.constant 0 : i32
    %c0_i32_0 = arith.constant 0 : i32
    %c0_i32_1 = arith.constant 0 : i32
    return %arg0, %c0_i32, %c0_i32_0 : i32, i32, i32
  }
}

</mosaic_0001>

<bundles_post_ra>
// kernel: _ma_update_call.1
= control target key start
LH: loop header
LB: loop body
LE: loop exit
PB: predicated region body
PF: predicated region fallthrough
CT: control target
= control target key end

     0   :  { %13 = vsyncpa [#allocation5], 0  ;;  %s436_s0 = inlined_call_operand.<no memory space> [shape: s32[1], index: 0, kind: input, shape index: {}]   ;;  %s437_s1 = inlined_call_operand.hbm [shape: f32[128,1,1024], index: 1, kind: input, shape index: {}, may-alias: {1,4}]   ;;  %s438_s2 = inlined_call_operand.hbm [shape: f32[1,1,1024], index: 2, kind: input, shape index: {}]   ;;  %s439_s3 = inlined_call_operand.hbm [shape: f32[1,1,1024], index: 3, kind: input, shape index: {}]   ;;  %s440_s4 = inlined_call_operand.hbm [shape: f32[128,1,1024], index: 4, kind: output, shape index: {0}, may-alias: {1,4}]   ;;  %s441_s5 = inlined_call_operand.hbm [shape: f32[1,1,1024], index: 5, kind: output, shape index: {1}]   ;;  %s442_s6 = inlined_call_operand.hbm [shape: f32[1,1,1024], index: 6, kind: output, shape index: {2}]  }
   0x1   :  { %14 = vsyncpa [#allocation8], 0 }
   0x2   :  { %15 = vsyncpa [#allocation6], 0  ;;  %s49_s23 = sshll.u32 %s438_s2, 4  ;;  %s50_s23 = int_to_ptr.hbm [resolvable:$true] %s49_s23 }
   0x3   :  { %16 = vsyncpa [#allocation12], 0  ;;  %s356_s24 = smov [#allocation7]   ;;  %p21_p0 = scmp.lt.s32.totalorder %s436_s0, 0 }
   0x4   :  { %s51_s25 = sshll.u32 %s356_s24, 4  ;;  %s22_s30 = ssub.s32 0, %s436_s0  ;;  %s52_s25 = int_to_ptr.vmem [resolvable:$true] %s51_s25 }
   0x5   :  { %54 = dma.hbm_to_vmem [thread:$0]  %s50_s23, 128, %s52_s25, [#allocation8]  }
   0x6   :  { %s190_s9 = smin.u32 %s22_s30, %s436_s0  ;;  %s357_s12 = smov [#allocation4]  }
   0x7   :  { %s24_s10 = sand.u32 127, %s190_s9   ;;  %s40_s13 = sshll.u32 %s357_s12, 4  ;;  %s41_s13 = int_to_ptr.vmem [resolvable:$true] %s40_s13 }
   0x8   :  { %s25_s2 = ssub.s32 0, %s24_s10  ;;  %s60_s16 = sshll.u32 %s439_s3, 4  ;;  %s61_s16 = int_to_ptr.hbm [resolvable:$true] %s60_s16 }
   0x9   :  { %s444_s2 = smov (!%p21_p0, %s25_s2), %s24_s10  ;;  %s358_s17 = smov [#allocation9]  }
   0xa   :  { %p192_p1 = scmp.lt.s32.totalorder %s444_s2, 0  ;;  %s31_s11 = sadd.s32 128, %s444_s2 }
   0xb   :  { %s62_s18 = sshll.u32 %s358_s17, 4  ;;  %s232_s3 = scalar_lea.hbm %s437_s1, 1024  ;;  %s63_s18 = int_to_ptr.vmem [resolvable:$true] %s62_s18 }
   0xc   :  { %s446_s11 = smov (!%p192_p1, %s31_s11), %s444_s2 }
   0xd   :  { %s193_s19 = sshll.u32 %s446_s11, 3 }
   0xe   :  { %s36_s0 = scalar_lea.hbm %s437_s1, %s193_s19 }
   0xf   :  { %s38_s22 = sshll.u32 %s36_s0, 4  ;;  %s39_s22 = int_to_ptr.hbm [resolvable:$true] %s38_s22 }
  0x10   :  { %s228_s23 = sshra.s32 %s39_s22, 4  ;;  %s229_s23 = int_to_ptr.hbm [resolvable:$true] %s228_s23 }
  0x11   :  { %s230_s24 = scalar_lea.hbm %s229_s23, 8  ;;  %p233_p3 = scmp.lt.s32.totalorder %s229_s23, %s437_s1 }
  0x12   :  { %p231_p2 = scmp.ne.s32.totalorder %s229_s23, %s230_s24  ;;  %p234_p4 = scmp.lt.s32.totalorder %s232_s3, %s230_s24 }
  0x14   :  { %p235_p5 = por %p234_p4, %p233_p3 }
  0x16   :  { %p236_p6 = pnand %p235_p5, %p231_p2 }
  0x18   :  { %239 = shalt.err (!%p236_p6)
}
  0x19   :  { %43 = dma.hbm_to_vmem [thread:$0]  %s39_s22, 128, %s41_s13, [#allocation5]  }
  0x1a   :  { %65 = dma.hbm_to_vmem [thread:$0]  %s61_s16, 128, %s63_s18, [#allocation8]  }
  0x1b   :  { %348 = dma.done.wait [#allocation5], 128  }
  0x1c   :  { %349 = vsyncadd [#allocation5], 4294967168 }
  0x1d   :  { %350 = dma.done.wait [#allocation8], 256  }
  0x1e   :  { %351 = vsyncadd [#allocation8], 4294967040  ;;  %s140_s7 = scalar_lea.hbm %s440_s4, %s193_s19  ;;  %s359_s9 = smov [#allocation10]   ;;  %v110_v0 = vld [vmem:[#allocation7] sm:$0xff]  ;;  %v112_v1 = vld [vmem:[#allocation9] sm:$0xff] }
  0x1f   :  { %s144_s8 = sshll.u32 %s140_s7, 4  ;;  %s142_s10 = sshll.u32 %s359_s9, 4  ;;  %v115_v2 = vld [vmem:[#allocation4] sm:$0xff]  ;;  %v114_v3 = vadd.f32 %v112_v1, %v110_v0  ;;  %118 = vst [vmem:[#allocation10] sm:$0xff] %v112_v1  ;;  %s143_s10 = int_to_ptr.vmem [resolvable:$true] %s142_s10  ;;  %s145_s8 = int_to_ptr.hbm [resolvable:$true] %s144_s8 }
  0x20   :  { %s360_s1 = smov [#allocation11]   ;;  %s155_s13 = sshll.u32 %s441_s5, 4  ;;  %s156_s13 = int_to_ptr.hbm [resolvable:$true] %s155_s13 }
  0x21   :  { %s153_s2 = sshll.u32 %s360_s1, 4  ;;  %s361_s14 = smov [#allocation13]   ;;  %s154_s2 = int_to_ptr.vmem [resolvable:$true] %s153_s2 }
  0x22   :  { %s164_s15 = sshll.u32 %s361_s14, 4  ;;  %s166_s18 = sshll.u32 %s442_s6, 4  ;;  %s165_s15 = int_to_ptr.vmem [resolvable:$true] %s164_s15  ;;  %s167_s18 = int_to_ptr.hbm [resolvable:$true] %s166_s18 }
  0x23   :  { %s288_s19 = sshra.s32 %s145_s8, 4  ;;  %s292_s22 = scalar_lea.hbm %s440_s4, 1024  ;;  %s289_s19 = int_to_ptr.hbm [resolvable:$true] %s288_s19 }
  0x24   :  { %s290_s20 = scalar_lea.hbm %s289_s19, 8  ;;  %p293_p8 = scmp.lt.s32.totalorder %s289_s19, %s440_s4 }
  0x25   :  { %p291_p7 = scmp.ne.s32.totalorder %s289_s19, %s290_s20  ;;  %p294_p9 = scmp.lt.s32.totalorder %s292_s22, %s290_s20 }
  0x27   :  { %p295_p10 = por %p294_p9, %p293_p8 }
  0x29   :  { %p296_p11 = pnand %p295_p10, %p291_p7 }
  0x2b   :  { %299 = shalt.err (!%p296_p11)
}
  0x2c   :  { %147 = dma.vmem_to_hbm [thread:$0]  %s143_s10, 128, %s145_s8, [#allocation6]   ;;  %v116_v4 = vsub.f32 %v114_v3, %v115_v2 }
  0x2e   :  { %117 = vst [vmem:[#allocation11] sm:$0xff] %v116_v4  ;;  %v119_v5 = vmul.f32 0.0078125, %v116_v4 }
  0x2f   :  { %158 = dma.vmem_to_hbm [thread:$0]  %s154_s2, 128, %s156_s13, [#allocation12]  }
  0x30   :  { %120 = vst [vmem:[#allocation13] sm:$0xff] %v119_v5 }
  0x31   :  { %169 = dma.vmem_to_hbm [thread:$0]  %s165_s15, 128, %s167_s18, [#allocation12]  }
  0x32   :  { %352 = dma.done.wait [#allocation6], 128  }
  0x33   :  { %353 = vsyncadd [#allocation6], 4294967168 }
  0x34   :  { %354 = dma.done.wait [#allocation12], 256  }
  0x35   :  { %355 = vsyncadd [#allocation12], 4294967040 }
  0x36   :  { %182 = vsyncpa [#allocation5], 1 }
  0x37   :  { %183 = vsyncpa [#allocation8], 1 }
  0x38   :  { %184 = vsyncpa [#allocation6], 1 }
  0x39   :  { %185 = vsyncpa [#allocation12], 1 }

</bundles_post_ra>
